<compile_context>
chip_gen: v5e
topology: v5e:2x2
jax: 0.10.0
libtpu: 0.0.40
codegen_flags: <defaults>
</compile_context>

<pallas_src>
import math
from functools import partial

import jax
import jax.numpy as jnp
from jax.experimental import pallas as pl
from jax.experimental.pallas import tpu as pltpu

LANE = 128
SUBLANE = 8


# ----------------------------------------------------------------------------
# Pallas kernel: fused 4-layer MLP (3 hidden ReLU layers + linear output)
# ----------------------------------------------------------------------------
def _fcnet_kernel(x_ref, w_first_ref, b_hid_ref, w_mid_ref, w_last_ref,
                  b_last_ref, o_ref, *, n_mid):
    compute_dtype = w_first_ref.dtype
    b_hid = b_hid_ref[...]          # (n_hidden_layers, H) f32, tiny

    # layer 1: Linear + ReLU   (bf16 operands, f32 accumulate)
    h = jnp.dot(x_ref[...], w_first_ref[...],
                preferred_element_type=jnp.float32)
    h = jnp.maximum(h + b_hid[0:1, :], 0.0)

    # middle hidden layers: Linear + ReLU
    for i in range(n_mid):
        h = jnp.dot(h.astype(compute_dtype), w_mid_ref[i],
                    preferred_element_type=jnp.float32)
        h = jnp.maximum(h + b_hid[i + 1:i + 2, :], 0.0)

    # output layer: Linear (no activation)
    o_ref[...] = (jnp.dot(h.astype(compute_dtype), w_last_ref[...],
                          preferred_element_type=jnp.float32)
                  + b_last_ref[...])


# ----------------------------------------------------------------------------
# One-time parameter packing (hoisted out of the per-call path)
# ----------------------------------------------------------------------------
def prepare_params(params, compute_dtype=jnp.bfloat16):
    """params: list of (W_in_out, b) f32 per layer (>= 2 layers).

    Packs:
      w_first  : (in_dim, H)        compute_dtype   (hidden dim zero-padded)
      b_hidden : (n_layers-1, H)    f32
      w_mid    : (max(n_mid,1), H, H) compute_dtype
      w_last   : (H, out_dim)       compute_dtype
      b_last   : (1, out_dim)       f32
    """
    n_layers = len(params)
    assert n_layers >= 2
    in_dim = params[0][0].shape[0]
    out_dim = params[-1][0].shape[1]
    hidden_dims = [w.shape[1] for (w, _) in params[:-1]]
    H = ((max(hidden_dims) + LANE - 1) // LANE) * LANE
    n_mid = n_layers - 2

    w1, b1 = params[0]
    w_first = jnp.zeros((in_dim, H), compute_dtype)
    w_first = w_first.at[:, :w1.shape[1]].set(w1.astype(compute_dtype))

    b_hidden = jnp.zeros((n_layers - 1, H), jnp.float32)
    b_hidden = b_hidden.at[0, :b1.shape[0]].set(b1.astype(jnp.float32))

    w_mid = jnp.zeros((max(n_mid, 1), H, H), compute_dtype)
    for i in range(n_mid):
        w, b = params[1 + i]
        w_mid = w_mid.at[i, :w.shape[0], :w.shape[1]].set(
            w.astype(compute_dtype))
        b_hidden = b_hidden.at[i + 1, :b.shape[0]].set(b.astype(jnp.float32))

    w_out, b_out = params[-1]
    w_last = jnp.zeros((H, out_dim), compute_dtype)
    w_last = w_last.at[:w_out.shape[0], :].set(w_out.astype(compute_dtype))
    b_last = b_out.astype(jnp.float32).reshape(1, out_dim)

    return dict(w_first=w_first, b_hidden=b_hidden, w_mid=w_mid,
                w_last=w_last, b_last=b_last,
                in_dim=in_dim, out_dim=out_dim, n_mid=n_mid,
                compute_dtype=compute_dtype)


# ----------------------------------------------------------------------------
# Forward pass
# ----------------------------------------------------------------------------
def fcnet_forward(x, packed, *, tile_b=512):
    """x: (B, in_dim). Returns (B, out_dim) f32."""
    B, in_dim = x.shape
    assert in_dim == packed["in_dim"]
    out_dim = packed["out_dim"]
    n_mid = packed["n_mid"]

    xb = x.astype(packed["compute_dtype"])

    # Round batch to a sublane multiple, pick tile, round up to tile multiple.
    Bp = ((B + SUBLANE - 1) // SUBLANE) * SUBLANE
    TB = min(tile_b, Bp)
    Bp = ((Bp + TB - 1) // TB) * TB
    if Bp != B:
        xb = jnp.pad(xb, ((0, Bp - B), (0, 0)))

    grid = (Bp // TB,)
    kernel = partial(_fcnet_kernel, n_mid=n_mid)

    out = pl.pallas_call(
        kernel,
        out_shape=jax.ShapeDtypeStruct((Bp, out_dim), jnp.float32),
        grid=grid,
        in_specs=[
            # streamed input: one batch tile per grid step
            pl.BlockSpec((TB, in_dim), lambda i: (i, 0)),
            # weights/biases: constant block index -> stay resident in VMEM
            pl.BlockSpec(packed["w_first"].shape, lambda i: (0, 0)),
            pl.BlockSpec(packed["b_hidden"].shape, lambda i: (0, 0)),
            pl.BlockSpec(packed["w_mid"].shape, lambda i: (0, 0, 0)),
            pl.BlockSpec(packed["w_last"].shape, lambda i: (0, 0)),
            pl.BlockSpec(packed["b_last"].shape, lambda i: (0, 0)),
        ],
        out_specs=pl.BlockSpec((TB, out_dim), lambda i: (i, 0)),
        compiler_params=pltpu.CompilerParams(
            dimension_semantics=("parallel",)),
    )(xb, packed["w_first"], packed["b_hidden"], packed["w_mid"],
      packed["w_last"], packed["b_last"])

    return out[:B]


# ----------------------------------------------------------------------------
# Deterministic parameter initialization (xavier_uniform, gain for 'relu')
# ----------------------------------------------------------------------------
def init_params(key, input_dim, output_dim=1, n_hiddens=(10, 10, 10)):
    neurons = [input_dim] + list(n_hiddens) + [output_dim]
    gain = math.sqrt(2.0)  # nn.init.calculate_gain('relu')
    params = []
    for i in range(len(neurons) - 1):
        fan_in, fan_out = neurons[i], neurons[i + 1]
        bound = gain * math.sqrt(6.0 / (fan_in + fan_out))
        key, sub = jax.random.split(key)
        # stored as (in, out) so y = x @ W + b
        w = jax.random.uniform(sub, (fan_in, fan_out),
                               minval=-bound, maxval=bound, dtype=jnp.float32)
        b = jnp.zeros((fan_out,), dtype=jnp.float32)
        params.append((w, b))
    return params


def fcnet_reference(x, params, cast_dtype=None):
    h = x
    n = len(params)
    for i, (w, b) in enumerate(params):
        if cast_dtype is not None:
            h_op, w_op = h.astype(cast_dtype), w.astype(cast_dtype)
        else:
            h_op, w_op = h, w
        h = jnp.dot(h_op, w_op, preferred_element_type=jnp.float32) + b
        if i < n - 1:
            h = jnp.maximum(h, 0.0)
    return h


if __name__ == "__main__":
    key = jax.random.PRNGKey(0)
    k_x, k_p = jax.random.split(key)

    batch, input_dim, output_dim = 8, 32, 1
    n_hiddens = [10, 10, 10]

    x = jax.random.normal(k_x, (batch, input_dim), dtype=jnp.float32)
    params = init_params(k_p, input_dim, output_dim, n_hiddens)
    packed = prepare_params(params)

    y = fcnet_forward(x, packed)
    y = jax.block_until_ready(y)

    assert y.shape == (batch, output_dim), y.shape

    # Tight check against a reference using the same bf16 operand cast.
    y_ref_bf16 = fcnet_reference(x, params, cast_dtype=jnp.bfloat16)
    assert jnp.allclose(y, y_ref_bf16, atol=1e-3, rtol=1e-3), (
        float(jnp.max(jnp.abs(y - y_ref_bf16))))

    # Loose sanity check against the full-f32 reference.
    y_ref_f32 = fcnet_reference(x, params)
    assert jnp.allclose(y, y_ref_f32, atol=2e-1, rtol=1e-1), (
        float(jnp.max(jnp.abs(y - y_ref_f32))))

    print("KERNEL_OK")
</pallas_src>

<mosaic_0001>
module attributes {stable_mosaic.version = 11 : i64} {
  func.func @_fcnet_kernel(%arg0: i32, %arg1: memref<8x32xbf16, #tpu.memory_space<vmem>>, %arg2: memref<32x128xbf16, #tpu.memory_space<vmem>>, %arg3: memref<3x128xf32, #tpu.memory_space<vmem>>, %arg4: memref<2x128x128xbf16, #tpu.memory_space<vmem>>, %arg5: memref<128x1xbf16, #tpu.memory_space<vmem>>, %arg6: memref<1x1xf32, #tpu.memory_space<vmem>>, %arg7: memref<8x1xf32, #tpu.memory_space<vmem>>) attributes {dimension_semantics = [#tpu.dimension_semantics<parallel>], iteration_bounds = array<i64: 1>, scalar_prefetch = 0 : i64, scratch_operands = 0 : i64, tpu.core_type = #tpu.core_type<tc>, window_params = [{transform_indices = @transform_0, window_bounds = array<i64: 8, 32>}, {pipeline_mode = #tpu.pipeline_mode<synchronous>, transform_indices = @transform_1, window_bounds = array<i64: 32, 128>}, {pipeline_mode = #tpu.pipeline_mode<synchronous>, transform_indices = @transform_2, window_bounds = array<i64: 3, 128>}, {pipeline_mode = #tpu.pipeline_mode<synchronous>, transform_indices = @transform_3, window_bounds = array<i64: 2, 128, 128>}, {pipeline_mode = #tpu.pipeline_mode<synchronous>, transform_indices = @transform_4, window_bounds = array<i64: 128, 1>}, {pipeline_mode = #tpu.pipeline_mode<synchronous>, transform_indices = @transform_5, window_bounds = array<i64: 1, 1>}, {transform_indices = @transform_6, window_bounds = array<i64: 8, 1>}]} {
    %c0 = arith.constant 0 : index
    %c0_0 = arith.constant 0 : index
    %0 = vector.load %arg3[%c0, %c0_0] : memref<3x128xf32, #tpu.memory_space<vmem>>, vector<3x128xf32>
    %c0_1 = arith.constant 0 : index
    %c0_2 = arith.constant 0 : index
    %1 = vector.load %arg1[%c0_1, %c0_2] : memref<8x32xbf16, #tpu.memory_space<vmem>>, vector<8x32xbf16>
    %c0_3 = arith.constant 0 : index
    %c0_4 = arith.constant 0 : index
    %2 = vector.load %arg2[%c0_3, %c0_4] : memref<32x128xbf16, #tpu.memory_space<vmem>>, vector<32x128xbf16>
    %cst = arith.constant dense<0.000000e+00> : vector<8x128xf32>
    %3 = tpu.matmul %1, %2, %cst {dimension_numbers = #tpu.dot_dimension_numbers<[1], [0], [0], [1], [0, 0, 1, 1], [], []>} : vector<8x32xbf16>, vector<32x128xbf16>, vector<8x128xf32> -> vector<8x128xf32>
    %4 = vector.extract_strided_slice %0 {offsets = [0, 0], sizes = [1, 128], strides = [1, 1]} : vector<3x128xf32> to vector<1x128xf32>
    %5 = vector.broadcast %4 : vector<1x128xf32> to vector<8x128xf32>
    %6 = arith.addf %3, %5 : vector<8x128xf32>
    %cst_5 = arith.constant 0.000000e+00 : f32
    %7 = vector.broadcast %cst_5 : f32 to vector<8x128xf32>
    %8 = arith.maximumf %6, %7 : vector<8x128xf32>
    %9 = arith.truncf %8 : vector<8x128xf32> to vector<8x128xbf16>
    %c0_6 = arith.constant 0 : index
    %c0_7 = arith.constant 0 : index
    %c0_8 = arith.constant 0 : index
    %10 = vector.load %arg4[%c0_6, %c0_7, %c0_8] : memref<2x128x128xbf16, #tpu.memory_space<vmem>>, vector<1x128x128xbf16>
    %11 = vector.shape_cast %10 : vector<1x128x128xbf16> to vector<128x128xbf16>
    %cst_9 = arith.constant dense<0.000000e+00> : vector<8x128xf32>
    %12 = tpu.matmul %9, %11, %cst_9 {dimension_numbers = #tpu.dot_dimension_numbers<[1], [0], [0], [1], [0, 0, 1, 1], [], []>} : vector<8x128xbf16>, vector<128x128xbf16>, vector<8x128xf32> -> vector<8x128xf32>
    %13 = vector.extract_strided_slice %0 {offsets = [1, 0], sizes = [1, 128], strides = [1, 1]} : vector<3x128xf32> to vector<1x128xf32>
    %14 = vector.broadcast %13 : vector<1x128xf32> to vector<8x128xf32>
    %15 = arith.addf %12, %14 : vector<8x128xf32>
    %cst_10 = arith.constant 0.000000e+00 : f32
    %16 = vector.broadcast %cst_10 : f32 to vector<8x128xf32>
    %17 = arith.maximumf %15, %16 : vector<8x128xf32>
    %18 = arith.truncf %17 : vector<8x128xf32> to vector<8x128xbf16>
    %c1 = arith.constant 1 : index
    %c0_11 = arith.constant 0 : index
    %c0_12 = arith.constant 0 : index
    %19 = vector.load %arg4[%c1, %c0_11, %c0_12] : memref<2x128x128xbf16, #tpu.memory_space<vmem>>, vector<1x128x128xbf16>
    %20 = vector.shape_cast %19 : vector<1x128x128xbf16> to vector<128x128xbf16>
    %cst_13 = arith.constant dense<0.000000e+00> : vector<8x128xf32>
    %21 = tpu.matmul %18, %20, %cst_13 {dimension_numbers = #tpu.dot_dimension_numbers<[1], [0], [0], [1], [0, 0, 1, 1], [], []>} : vector<8x128xbf16>, vector<128x128xbf16>, vector<8x128xf32> -> vector<8x128xf32>
    %22 = vector.extract_strided_slice %0 {offsets = [2, 0], sizes = [1, 128], strides = [1, 1]} : vector<3x128xf32> to vector<1x128xf32>
    %23 = vector.broadcast %22 : vector<1x128xf32> to vector<8x128xf32>
    %24 = arith.addf %21, %23 : vector<8x128xf32>
    %cst_14 = arith.constant 0.000000e+00 : f32
    %25 = vector.broadcast %cst_14 : f32 to vector<8x128xf32>
    %26 = arith.maximumf %24, %25 : vector<8x128xf32>
    %27 = arith.truncf %26 : vector<8x128xf32> to vector<8x128xbf16>
    %c0_15 = arith.constant 0 : index
    %c0_16 = arith.constant 0 : index
    %28 = vector.load %arg5[%c0_15, %c0_16] : memref<128x1xbf16, #tpu.memory_space<vmem>>, vector<128x1xbf16>
    %cst_17 = arith.constant dense<0.000000e+00> : vector<8x1xf32>
    %29 = tpu.matmul %27, %28, %cst_17 {dimension_numbers = #tpu.dot_dimension_numbers<[1], [0], [0], [1], [0, 0, 1, 1], [], []>} : vector<8x128xbf16>, vector<128x1xbf16>, vector<8x1xf32> -> vector<8x1xf32>
    %c0_18 = arith.constant 0 : index
    %c0_19 = arith.constant 0 : index
    %30 = vector.load %arg6[%c0_18, %c0_19] : memref<1x1xf32, #tpu.memory_space<vmem>>, vector<1x1xf32>
    %31 = vector.broadcast %30 : vector<1x1xf32> to vector<8x1xf32>
    %32 = arith.addf %29, %31 : vector<8x1xf32>
    %c0_20 = arith.constant 0 : index
    %c0_21 = arith.constant 0 : index
    %33 = vector.load %arg7[%c0_20, %c0_21] : memref<8x1xf32, #tpu.memory_space<vmem>>, vector<8x1xf32>
    tpu.vector_store %arg7[%c0_20, %c0_21], %32 {strides = array<i32>} : memref<8x1xf32, #tpu.memory_space<vmem>>, vector<8x1xf32>,
    return
  }
  func.func @transform_0(%arg0: i32) -> (i32, i32) {
    %c0_i32 = arith.constant 0 : i32
    %c0_i32_0 = arith.constant 0 : i32
    return %arg0, %c0_i32 : i32, i32
  }
  func.func @transform_1(%arg0: i32) -> (i32, i32) {
    %c0_i32 = arith.constant 0 : i32
    %c0_i32_0 = arith.constant 0 : i32
    %c0_i32_1 = arith.constant 0 : i32
    return %c0_i32, %c0_i32_0 : i32, i32
  }
  func.func @transform_2(%arg0: i32) -> (i32, i32) {
    %c0_i32 = arith.constant 0 : i32
    %c0_i32_0 = arith.constant 0 : i32
    %c0_i32_1 = arith.constant 0 : i32
    return %c0_i32, %c0_i32_0 : i32, i32
  }
  func.func @transform_3(%arg0: i32) -> (i32, i32, i32) {
    %c0_i32 = arith.constant 0 : i32
    %c0_i32_0 = arith.constant 0 : i32
    %c0_i32_1 = arith.constant 0 : i32
    %c0_i32_2 = arith.constant 0 : i32
    return %c0_i32, %c0_i32_0, %c0_i32_1 : i32, i32, i32
  }
  func.func @transform_4(%arg0: i32) -> (i32, i32) {
    %c0_i32 = arith.constant 0 : i32
    %c0_i32_0 = arith.constant 0 : i32
    %c0_i32_1 = arith.constant 0 : i32
    return %c0_i32, %c0_i32_0 : i32, i32
  }
  func.func @transform_5(%arg0: i32) -> (i32, i32) {
    %c0_i32 = arith.constant 0 : i32
    %c0_i32_0 = arith.constant 0 : i32
    %c0_i32_1 = arith.constant 0 : i32
    return %c0_i32, %c0_i32_0 : i32, i32
  }
  func.func @transform_6(%arg0: i32) -> (i32, i32) {
    %c0_i32 = arith.constant 0 : i32
    %c0_i32_0 = arith.constant 0 : i32
    return %arg0, %c0_i32 : i32, i32
  }
}

</mosaic_0001>

<bundles_post_ra>
// kernel: tpu_custom_call.1
= control target key start
LH: loop header
LB: loop body
LE: loop exit
PB: predicated region body
PF: predicated region fallthrough
CT: control target
= control target key end

     0   :  { %s573_s0 = inlined_call_operand.vmem [shape: bf16[8,32], index: 0, kind: input, shape index: {}]   ;;  %s574_s1 = inlined_call_operand.vmem [shape: bf16[32,128], index: 1, kind: input, shape index: {}]   ;;  %s575_s2 = inlined_call_operand.vmem [shape: f32[3,128], index: 2, kind: input, shape index: {}]   ;;  %s576_s3 = inlined_call_operand.hbm [shape: bf16[2,128,128], index: 3, kind: input, shape index: {}]   ;;  %s577_s4 = inlined_call_operand.vmem [shape: bf16[128,1], index: 4, kind: input, shape index: {}]   ;;  %s578_s5 = inlined_call_operand.<no memory space> [shape: f32[1,1], index: 5, kind: input, shape index: {}]   ;;  %s579_s6 = inlined_call_operand.vmem [shape: f32[8,1], index: 6, kind: output, shape index: {}]  }
   0x1   :  { %v11_v0 = vstv %s578_s5 }
   0x2   :  { %12 = vst [vmem:[#allocation2] sm:$0x1] %v11_v0 }
   0x3   :  { %13 = vsyncpa [#allocation4], 0  ;;  %s24_s25 = sshll.u32 %s576_s3, 4  ;;  %s490_s26 = smov [#allocation3]   ;;  %s25_s25 = int_to_ptr.hbm [resolvable:$true] %s24_s25 }
   0x4   :  { %s26_s27 = sshll.u32 %s490_s26, 4  ;;  %s491_s28 = smov 64   ;;  %s27_s27 = int_to_ptr.vmem [resolvable:$true] %s26_s27 }
   0x5   :  { %s492_s29 = smov 4  }
   0x6   :  { %32 = dma.hbm_to_vmem [thread:$0]  %s25_s25, 2048, %s27_s27, [#allocation4], %s491_s28, %s491_s28, %s492_s29  }
   0x7   :  { %488 = dma.done.wait [#allocation4], 2048  }
   0x8   :  { %489 = vsyncadd [#allocation4], 4294965248  ;;  %v435_v1 = vld [vmem:[%s574_s1 + $0x8] sm:$0xff]  ;;  %v443_v2 = vld [vmem:[#allocation3 + $0x38] sm:$0xff]  ;;  %vm61_vm0 = vcmask 261120   ;;  %vm322_vm1 = vcmask 7168  }
   0x9   :  { %71 = vmatpush.bf16.msra.mxu0 %v435_v1  ;;  %v434_v3 = vld [vmem:[%s574_s1] sm:$0xff]  ;;  %145 = vmatpush.bf16.msra.mxu1 %v443_v2  ;;  %v442_v4 = vld [vmem:[#allocation3 + $0x30] sm:$0xff]  ;;  %v441_v6 = vld [vmem:[#allocation3 + $0x28] sm:$0xff] }
   0xa   :  { %v43_v5 = vld [vmem:[%s573_s0] sm:$0xf]  ;;  %v438_v9 = vld [vmem:[#allocation3 + $0x10] sm:$0xff]  ;;  %v437_v10 = vld [vmem:[#allocation3 + $0x8] sm:$0xff] }
   0xb   :  { %v440_v7 = vld [vmem:[#allocation3 + $0x20] sm:$0xff]  ;;  %v439_v8 = vld [vmem:[#allocation3 + $0x18] sm:$0xff]  ;;  %v450_v13 = vld [vmem:[#allocation3 + $0x70] sm:$0xff] }
   0xc   :  { %v436_v11 = vld [vmem:[#allocation3] sm:$0xff]  ;;  %v451_v12 = vld [vmem:[#allocation3 + $0x78] sm:$0xff]  ;;  %v449_v14 = vld [vmem:[#allocation3 + $0x68] sm:$0xff] }
   0xd   :  { %72 = vmatpush.bf16.msra.mxu0 %v434_v3  ;;  %146 = vmatpush.bf16.msra.mxu1 %v442_v4  ;;  %v448_v15 = vld [vmem:[#allocation3 + $0x60] sm:$0xff]  ;;  %v447_v16 = vld [vmem:[#allocation3 + $0x58] sm:$0xff]  ;;  %v446_v18 = vld [vmem:[#allocation3 + $0x50] sm:$0xff] }
   0xe   :  { %226 = vmatpush.bf16.msra.mxu2 %v451_v12  ;;  %v42_v17 = vld [vmem:[%s575_s2] sm:$0x7]  ;;  %v445_v25 = vld [vmem:[#allocation3 + $0x48] sm:$0xff]  ;;  %v459_v27 = vld [vmem:[%s577_s4 + $0x38] sm:$0xff] }
   0xf   :  { %v48_v19 = vperm.slane %v42_v17, 0  ;;  %v444_v26 = vld [vmem:[#allocation3 + $0x40] sm:$0xff]  ;;  %309 = vmatpush.bf16.msra.mxu3 %v459_v27  ;;  %v458_v28 = vld [vmem:[%s577_s4 + $0x30] sm:$0xff]  ;;  %v455_v31 = vld [vmem:[%s577_s4 + $0x18] sm:$0xff]  ;;  %v96_v33 = vperm.slane %v42_v17, 1  ;;  %v177_v41 = vperm.slane %v42_v17, 2 }
  0x10   :  { %337 = vmatmul.msk.bf16.vlgmr.msra.gmra.mxu0 %vm61_vm0, %v43_v5  ;;  %v457_v29 = vld [vmem:[%s577_s4 + $0x28] sm:$0xff]  ;;  %v456_v30 = vld [vmem:[%s577_s4 + $0x20] sm:$0xff]  ;;  %v454_v32 = vld [vmem:[%s577_s4 + $0x10] sm:$0xff] }
  0x11   :  { %147 = vmatpush.bf16.msra.mxu1 %v441_v6  ;;  %v453_v39 = vld [vmem:[%s577_s4 + $0x8] sm:$0xff]  ;;  %v452_v40 = vld [vmem:[%s577_s4] sm:$0xff] }
  0x12   :  { %227 = vmatpush.bf16.msra.mxu2 %v450_v13  ;;  %v463_v47 = vld [vmem:[#allocation2] ss:$0 sm:$0xff] }
  0x13   :  { %310 = vmatpush.bf16.msra.mxu3 %v458_v28 }
  0x15   :  { %148 = vmatpush.bf16.msra.mxu1 %v440_v7 }
  0x16   :  { %228 = vmatpush.bf16.msra.mxu2 %v449_v14 }
  0x17   :  { %311 = vmatpush.bf16.msra.mxu3 %v457_v29 }
  0x19   :  { %149 = vmatpush.bf16.msra.mxu1 %v439_v8 }
  0x1a   :  { %229 = vmatpush.bf16.msra.mxu2 %v448_v15 }
  0x1b   :  { %312 = vmatpush.bf16.msra.mxu3 %v456_v30 }
  0x1d   :  { %150 = vmatpush.bf16.msra.mxu1 %v438_v9 }
  0x1e   :  { %230 = vmatpush.bf16.msra.mxu2 %v447_v16 }
  0x1f   :  { %313 = vmatpush.bf16.msra.mxu3 %v455_v31 }
  0x21   :  { %151 = vmatpush.bf16.msra.mxu1 %v437_v10 }
  0x22   :  { %231 = vmatpush.bf16.msra.mxu2 %v446_v18 }
  0x23   :  { %314 = vmatpush.bf16.msra.mxu3 %v454_v32 }
  0x25   :  { %152 = vmatpush.bf16.msra.mxu1 %v436_v11 }
  0x26   :  { %232 = vmatpush.bf16.msra.mxu2 %v445_v25 }
  0x27   :  { %315 = vmatpush.bf16.msra.mxu3 %v453_v39 }
  0x2a   :  { %233 = vmatpush.bf16.msra.mxu2 %v444_v26 }
  0x2b   :  { %316 = vmatpush.bf16.msra.mxu3 %v452_v40 }
  0x8d   :  { %v74_v20 = vpop.f32.mrf.mxu0 }
  0x8e   :  { %v75_v21 = vadd.f32 %v74_v20, %v48_v19 }
  0x90   :  { %v78_v22 = vmax.f32 %v75_v21, 0.0 }
  0x92   :  { %v79_v23 = vpack.c.bf16 %v78_v22, %v78_v22 }
  0x94   :  { %153 = vmatmul.bf16.vlgmr.msra.gmra.mxu1 %v79_v23 }
  0x95   :  { %v76_v24 = vpop.f32.mrf.mxu0 }
 0x111   :  { %v154_v34 = vpop.f32.mrf.mxu1 }
 0x112   :  { %v155_v35 = vadd.f32 %v154_v34, %v96_v33 }
 0x114   :  { %v158_v36 = vmax.f32 %v155_v35, 0.0 }
 0x116   :  { %v159_v37 = vpack.c.bf16 %v158_v36, %v158_v36 }
 0x118   :  { %234 = vmatmul.bf16.vlgmr.msra.gmra.mxu2 %v159_v37 }
 0x119   :  { %v156_v38 = vpop.f32.mrf.mxu1 }
 0x19b   :  { %v235_v42 = vpop.f32.mrf.mxu2 }
 0x19c   :  { %v236_v43 = vadd.f32 %v235_v42, %v177_v41 }
 0x19e   :  { %v239_v44 = vmax.f32 %v236_v43, 0.0 }
 0x1a0   :  { %v240_v45 = vpack.c.bf16 %v239_v44, %v239_v44 }
 0x1a2   :  { %317 = vmatmul.bf16.vlgmr.msra.gmra.mxu3 %v240_v45 }
 0x1a3   :  { %v237_v46 = vpop.f32.mrf.mxu2 }
 0x225   :  { %v318_v48 = vpop.f32.mrf.mxu3 }
 0x226   :  { %v319_v49 = vadd.f32 %v463_v47, %v318_v48 }
 0x228   :  { %323 = vst.msk [vmem:[%s579_s6] sm:$0xff] %vm322_vm1, %v319_v49 }
 0x22d   :  { %v320_v50 = vpop.f32.mrf.mxu3 }
 0x22e   :  { %328 = vsyncpa [#allocation4], 1 }

</bundles_post_ra>
